<compile_context>
chip_gen: v5e
topology: v5e:2x2
jax: 0.10.0
libtpu: 0.0.40
codegen_flags: <defaults>
</compile_context>

<pallas_src>
import functools

import jax
import jax.numpy as jnp
from jax.experimental import pallas as pl
from jax.experimental.pallas import tpu as pltpu


# ---------------------------------------------------------------------------
# Kernels
# ---------------------------------------------------------------------------
def _se_mlp_col(p_col, w1t_ref, b1_ref, w2t_ref, b2_ref):
    """Column-form SE-MLP: p_col (C, 1) f32 pooled means -> (C, 1) f32 score.

    Weights arrive pre-transposed / column-shaped (w1t:(Cr,C), b1:(Cr,1),
    w2t:(C,Cr), b2:(C,1)) so both layers are plain matvecs and the pooled
    vector never needs an in-kernel lane<->sublane relayout.
    """
    h = jnp.dot(w1t_ref[...].astype(jnp.float32), p_col,
                preferred_element_type=jnp.float32)
    h = h + b1_ref[...].astype(jnp.float32)                      # (Cr, 1)
    h = jnp.where(h > 0, h, 0.2 * h)                             # LeakyReLU(0.2)
    s = jnp.dot(w2t_ref[...].astype(jnp.float32), h,
                preferred_element_type=jnp.float32)
    s = s + b2_ref[...].astype(jnp.float32)                      # (C, 1)
    return jax.nn.sigmoid(s)                                     # (C, 1) f32


def _fused_kernel(x_ref, w1t_ref, b1_ref, w2t_ref, b2_ref, o_ref, *, inv_hw):
    """One batch slice per grid step: pool + SE-MLP + gate; x read from HBM once."""
    # Two separate ref reads (sum, then multiply) so no huge value stays live
    # across the MLP (avoids vreg spill pressure for large blocks).
    p = jnp.sum(x_ref[...], axis=-1, keepdims=True,
                dtype=jnp.float32)                               # (1, C, 1)
    score = _se_mlp_col(p[0] * inv_hw, w1t_ref, b1_ref, w2t_ref, b2_ref)
    o_ref[...] = x_ref[...] * score[None].astype(o_ref.dtype)    # (1,C,HW)*(1,C,1)


def _pool_score_kernel(x_ref, w1t_ref, b1_ref, w2t_ref, b2_ref, score_ref,
                       acc_ref, *, inv_hw, thw, hw, needs_mask):
    """Accumulate per-channel sums over HW tiles; finalize mean + SE-MLP + sigmoid."""
    t = pl.program_id(1)

    @pl.when(t == 0)
    def _():
        acc_ref[...] = jnp.zeros_like(acc_ref)

    x = x_ref[...]                                               # (1, C, thw)
    if needs_mask:
        # Last tile may be partial (cdiv grid): zero the out-of-range lanes so
        # the pooled mean stays exact.
        lane = jax.lax.broadcasted_iota(jnp.int32, x.shape, 2)
        x = jnp.where(lane < hw - t * thw, x, jnp.zeros((), x.dtype))

    # f32 accumulation without materializing an f32 copy of the whole tile.
    acc_ref[...] += jnp.sum(x, axis=-1, keepdims=True, dtype=jnp.float32)

    @pl.when(t == pl.num_programs(1) - 1)
    def _():
        p = acc_ref[0] * inv_hw                                  # (C, 1): mean over FULL HW
        score_ref[...] = _se_mlp_col(p, w1t_ref, b1_ref, w2t_ref, b2_ref)[None]


def _gate_kernel(x_ref, s_ref, o_ref):
    """out_tile = x_tile * score, score broadcast over the spatial (lane) dim."""
    o_ref[...] = x_ref[...] * s_ref[...].astype(o_ref.dtype)


# ---------------------------------------------------------------------------
# Wrapper helpers
# ---------------------------------------------------------------------------
def _vmem_capacity_bytes():
    """Per-core VMEM capacity; conservative (v7x = 64 MiB) if the query fails."""
    try:
        cap = getattr(pltpu.get_tpu_info(), "vmem_capacity_bytes", None)
        if cap:
            return int(cap)
    except Exception:
        pass
    return 64 * 1024 * 1024


def _pick_hw_tile(hw, c, itemsize, budget_bytes):
    """Largest lane-dense (multiple-of-128) HW tile whose (C, tile) block fits budget.

    If the whole spatial extent fits, use it (a block equal to the full array
    dim is always legal).  Otherwise prefer an exact divisor of hw (no mask
    needed); if none exists, return the budget-sized tile — the caller then
    uses a pl.cdiv grid with a masked final tile instead of a full-HW block.
    """
    max_lanes = max(128, (budget_bytes // max(1, c * itemsize)) // 128 * 128)
    if hw <= max_lanes:
        return hw
    best = None
    t = 128
    while t <= max_lanes:
        if hw % t == 0:
            best = t
        t += 128
    return best if best is not None else max_lanes


# ---------------------------------------------------------------------------
# Public entry point
# ---------------------------------------------------------------------------
def channel_attention(x, w1, b1, w2, b2, *, force_two_pass=False):
    """x: [B, C, H, W] (NCHW).  w1:(C,Cr) b1:(1,Cr) w2:(Cr,C) b2:(1,C).

    Parameters use the (in, out) layout, equivalent to
    Conv2d(C, Cr, 1, bias=True) / Conv2d(Cr, C, 1, bias=True) on a 1x1 map.
    """
    B, C, H, W = x.shape
    HW = H * W
    Cr = w1.shape[1]
    inv_hw = 1.0 / HW
    itemsize = x.dtype.itemsize

    x_flat = x.reshape(B, C, HW)

    # Column-form parameters (tiny one-time HBM-level transforms; in a real
    # model these would simply be stored in this layout).
    w1t = jnp.transpose(w1)            # (Cr, C)
    w2t = jnp.transpose(w2)            # (C, Cr)
    b1c = b1.reshape(Cr, 1)
    b2c = b2.reshape(C, 1)

    vmem_cap = _vmem_capacity_bytes()
    usable = (vmem_cap * 3) // 4                         # leave compiler headroom
    weight_bytes = 4 * (C * Cr + Cr + Cr * C + C)

    # ---- Fused single pass: pool + SE-MLP + gate in one launch --------------
    slice_bytes = C * HW * itemsize
    # in + out blocks, double-buffered, plus weights and margin.
    fused_need = 4 * slice_bytes + weight_bytes + (4 << 20)
    if not force_two_pass and fused_need <= usable:
        out_flat = pl.pallas_call(
            functools.partial(_fused_kernel, inv_hw=inv_hw),
            out_shape=jax.ShapeDtypeStruct((B, C, HW), x.dtype),
            grid_spec=pltpu.PrefetchScalarGridSpec(
                num_scalar_prefetch=0,
                grid=(B,),
                in_specs=[
                    pl.BlockSpec((1, C, HW), lambda b: (b, 0, 0)),
                    pl.BlockSpec((Cr, C), lambda b: (0, 0)),   # resident weights
                    pl.BlockSpec((Cr, 1), lambda b: (0, 0)),
                    pl.BlockSpec((C, Cr), lambda b: (0, 0)),
                    pl.BlockSpec((C, 1), lambda b: (0, 0)),
                ],
                out_specs=pl.BlockSpec((1, C, HW), lambda b: (b, 0, 0)),
            ),
            compiler_params=pltpu.CompilerParams(
                dimension_semantics=("parallel",),
                vmem_limit_bytes=int(min(usable, max(32 << 20, fused_need)))),
        )(x_flat, w1t, b1c, w2t, b2c)
        return out_flat.reshape(B, C, H, W)

    # ---- Two-pass fallback for large feature maps ----------------------------
    # Generation-aware tile budget: ~4 MiB on v7x (64 MiB VMEM), ~8 MiB on
    # v5e/v6e (128 MiB VMEM) — big enough to amortize the ~0.35 us/step
    # overhead against HBM bandwidth, small enough to fit double-buffering.
    tile_budget = max(2 << 20, min(8 << 20, usable // 12))
    thw = _pick_hw_tile(HW, C, itemsize, tile_budget)
    n_hw = pl.cdiv(HW, thw)
    needs_mask = (HW % thw) != 0
    tile_bytes = C * thw * itemsize
    vmem_limit = int(min(usable, max(32 << 20, 4 * tile_bytes + (8 << 20))))

    # Pass 1: per-(batch, channel) spatial mean + SE-MLP -> sigmoid score (B, C, 1).
    score = pl.pallas_call(
        functools.partial(_pool_score_kernel, inv_hw=inv_hw, thw=thw, hw=HW,
                          needs_mask=needs_mask),
        out_shape=jax.ShapeDtypeStruct((B, C, 1), jnp.float32),
        grid_spec=pltpu.PrefetchScalarGridSpec(
            num_scalar_prefetch=0,
            grid=(B, n_hw),
            in_specs=[
                pl.BlockSpec((1, C, thw), lambda b, t: (b, 0, t)),
                pl.BlockSpec((Cr, C), lambda b, t: (0, 0)),   # DMA'd once, resident
                pl.BlockSpec((Cr, 1), lambda b, t: (0, 0)),
                pl.BlockSpec((C, Cr), lambda b, t: (0, 0)),
                pl.BlockSpec((C, 1), lambda b, t: (0, 0)),
            ],
            out_specs=pl.BlockSpec((1, C, 1), lambda b, t: (b, 0, 0)),
            scratch_shapes=[pltpu.VMEM((1, C, 1), jnp.float32)],
        ),
        compiler_params=pltpu.CompilerParams(
            dimension_semantics=("parallel", "arbitrary"),
            vmem_limit_bytes=vmem_limit),
    )(x_flat, w1t, b1c, w2t, b2c)

    # Pass 2: gate x by the per-channel score (HBM-bandwidth bound).
    # No mask needed: writes in the padded tail of a partial tile are dropped.
    out_flat = pl.pallas_call(
        _gate_kernel,
        out_shape=jax.ShapeDtypeStruct((B, C, HW), x.dtype),
        grid_spec=pltpu.PrefetchScalarGridSpec(
            num_scalar_prefetch=0,
            grid=(B, n_hw),
            in_specs=[
                pl.BlockSpec((1, C, thw), lambda b, t: (b, 0, t)),
                pl.BlockSpec((1, C, 1), lambda b, t: (b, 0, 0)),
            ],
            out_specs=pl.BlockSpec((1, C, thw), lambda b, t: (b, 0, t)),
        ),
        compiler_params=pltpu.CompilerParams(
            dimension_semantics=("parallel", "parallel"),
            vmem_limit_bytes=vmem_limit),
    )(x_flat, score)

    return out_flat.reshape(B, C, H, W)


# ---------------------------------------------------------------------------
# Reference & test
# ---------------------------------------------------------------------------
def _reference(x, w1, b1, w2, b2):
    pooled = jnp.mean(x, axis=(2, 3))                        # (B, C)
    h = pooled @ w1 + b1
    h = jnp.where(h > 0, h, 0.2 * h)
    s = h @ w2 + b2
    return x * jax.nn.sigmoid(s)[:, :, None, None]


if __name__ == "__main__":
    # Module config: channels=64, reduction=8 -> hidden=8
    B, C, H, W = 2, 64, 16, 16
    reduction = 8
    Cr = C // reduction

    key = jax.random.PRNGKey(0)
    k_x, k_w1, k_b1, k_w2, k_b2 = jax.random.split(key, 5)

    x = jax.random.normal(k_x, (B, C, H, W), dtype=jnp.float32)

    # Parameters stored transposed as (in, out) so the math is pooled @ W + b
    # (equivalent to Conv2d(C, Cr, 1) / Conv2d(Cr, C, 1) with bias).
    w1 = jax.random.normal(k_w1, (C, Cr), dtype=jnp.float32) * 0.1
    b1 = jax.random.normal(k_b1, (1, Cr), dtype=jnp.float32) * 0.1
    w2 = jax.random.normal(k_w2, (Cr, C), dtype=jnp.float32) * 0.1
    b2 = jax.random.normal(k_b2, (1, C), dtype=jnp.float32) * 0.1

    ref = _reference(x, w1, b1, w2, b2)

    # Fused single-launch path (taken for small feature maps).
    out = jax.block_until_ready(channel_attention(x, w1, b1, w2, b2))
    assert out.shape == x.shape and out.dtype == x.dtype
    assert jnp.allclose(out, ref, atol=1e-5, rtol=1e-5), "fused path mismatch"

    # Two-pass fallback path (large-image code path, exercised explicitly).
    out2 = jax.block_until_ready(
        channel_attention(x, w1, b1, w2, b2, force_two_pass=True))
    assert out2.shape == x.shape and out2.dtype == x.dtype
    assert jnp.allclose(out2, ref, atol=1e-5, rtol=1e-5), "two-pass path mismatch"

    print("KERNEL_OK")
</pallas_src>

<mosaic_0001>
module attributes {stable_mosaic.version = 11 : i64} {
  func.func @_fused_kernel(%arg0: i32, %arg1: memref<1x64x256xf32, #tpu.memory_space<vmem>>, %arg2: memref<8x64xf32, #tpu.memory_space<vmem>>, %arg3: memref<8x1xf32, #tpu.memory_space<vmem>>, %arg4: memref<64x8xf32, #tpu.memory_space<vmem>>, %arg5: memref<64x1xf32, #tpu.memory_space<vmem>>, %arg6: memref<1x64x256xf32, #tpu.memory_space<vmem>>) attributes {dimension_semantics = [#tpu.dimension_semantics<parallel>], iteration_bounds = array<i64: 2>, scalar_prefetch = 0 : i64, scratch_operands = 0 : i64, tpu.core_type = #tpu.core_type<tc>, window_params = [{transform_indices = @transform_0, window_bounds = array<i64: 1, 64, 256>}, {pipeline_mode = #tpu.pipeline_mode<synchronous>, transform_indices = @transform_1, window_bounds = array<i64: 8, 64>}, {pipeline_mode = #tpu.pipeline_mode<synchronous>, transform_indices = @transform_2, window_bounds = array<i64: 8, 1>}, {pipeline_mode = #tpu.pipeline_mode<synchronous>, transform_indices = @transform_3, window_bounds = array<i64: 64, 8>}, {pipeline_mode = #tpu.pipeline_mode<synchronous>, transform_indices = @transform_4, window_bounds = array<i64: 64, 1>}, {transform_indices = @transform_5, window_bounds = array<i64: 1, 64, 256>}]} {
    %c0 = arith.constant 0 : index
    %c0_0 = arith.constant 0 : index
    %c0_1 = arith.constant 0 : index
    %0 = vector.load %arg1[%c0, %c0_0, %c0_1] : memref<1x64x256xf32, #tpu.memory_space<vmem>>, vector<1x64x256xf32>
    %cst = arith.constant dense<0.000000e+00> : vector<1x64xf32>
    %1 = vector.multi_reduction <add>, %0, %cst [2] : vector<1x64x256xf32> to vector<1x64xf32>
    %2 = vector.shape_cast %1 : vector<1x64xf32> to vector<1x64x1xf32>
    %3 = vector.shape_cast %2 : vector<1x64x1xf32> to vector<64x1xf32>
    %cst_2 = arith.constant 3.906250e-03 : f32
    %4 = vector.broadcast %cst_2 : f32 to vector<64x1xf32>
    %5 = arith.mulf %3, %4 : vector<64x1xf32>
    %c0_3 = arith.constant 0 : index
    %c0_4 = arith.constant 0 : index
    %6 = vector.load %arg2[%c0_3, %c0_4] : memref<8x64xf32, #tpu.memory_space<vmem>>, vector<8x64xf32>
    %cst_5 = arith.constant dense<0.000000e+00> : vector<8x1xf32>
    %7 = tpu.matmul %6, %5, %cst_5 {dimension_numbers = #tpu.dot_dimension_numbers<[1], [0], [0], [1], [0, 0, 1, 1], [], []>} : vector<8x64xf32>, vector<64x1xf32>, vector<8x1xf32> -> vector<8x1xf32>
    %c0_6 = arith.constant 0 : index
    %c0_7 = arith.constant 0 : index
    %8 = vector.load %arg3[%c0_6, %c0_7] : memref<8x1xf32, #tpu.memory_space<vmem>>, vector<8x1xf32>
    %9 = arith.addf %7, %8 : vector<8x1xf32>
    %cst_8 = arith.constant 0.000000e+00 : f32
    %10 = vector.broadcast %cst_8 : f32 to vector<8x1xf32>
    %11 = arith.cmpf ogt, %9, %10 : vector<8x1xf32>
    %cst_9 = arith.constant 2.000000e-01 : f32
    %12 = vector.broadcast %cst_9 : f32 to vector<8x1xf32>
    %13 = arith.mulf %12, %9 : vector<8x1xf32>
    %14 = arith.select %11, %9, %13 : vector<8x1xi1>, vector<8x1xf32>
    %c0_10 = arith.constant 0 : index
    %c0_11 = arith.constant 0 : index
    %15 = vector.load %arg4[%c0_10, %c0_11] : memref<64x8xf32, #tpu.memory_space<vmem>>, vector<64x8xf32>
    %cst_12 = arith.constant dense<0.000000e+00> : vector<64x1xf32>
    %16 = tpu.matmul %15, %14, %cst_12 {dimension_numbers = #tpu.dot_dimension_numbers<[1], [0], [0], [1], [0, 0, 1, 1], [], []>} : vector<64x8xf32>, vector<8x1xf32>, vector<64x1xf32> -> vector<64x1xf32>
    %c0_13 = arith.constant 0 : index
    %c0_14 = arith.constant 0 : index
    %17 = vector.load %arg5[%c0_13, %c0_14] : memref<64x1xf32, #tpu.memory_space<vmem>>, vector<64x1xf32>
    %18 = arith.addf %16, %17 : vector<64x1xf32>
    %19 = arith.negf %18 : vector<64x1xf32>
    %20 = math.exp %19 : vector<64x1xf32>
    %cst_15 = arith.constant 1.000000e+00 : f32
    %21 = vector.broadcast %cst_15 : f32 to vector<64x1xf32>
    %22 = arith.addf %21, %20 : vector<64x1xf32>
    %23 = arith.divf %21, %22 : vector<64x1xf32>
    %c0_16 = arith.constant 0 : index
    %c0_17 = arith.constant 0 : index
    %c0_18 = arith.constant 0 : index
    %24 = vector.load %arg1[%c0_16, %c0_17, %c0_18] : memref<1x64x256xf32, #tpu.memory_space<vmem>>, vector<1x64x256xf32>
    %25 = vector.shape_cast %23 : vector<64x1xf32> to vector<1x64x1xf32>
    %26 = vector.broadcast %25 : vector<1x64x1xf32> to vector<1x64x256xf32>
    %27 = arith.mulf %24, %26 : vector<1x64x256xf32>
    %c0_19 = arith.constant 0 : index
    %c0_20 = arith.constant 0 : index
    %c0_21 = arith.constant 0 : index
    %28 = vector.load %arg6[%c0_19, %c0_20, %c0_21] : memref<1x64x256xf32, #tpu.memory_space<vmem>>, vector<1x64x256xf32>
    tpu.vector_store %arg6[%c0_19, %c0_20, %c0_21], %27 {strides = array<i32>} : memref<1x64x256xf32, #tpu.memory_space<vmem>>, vector<1x64x256xf32>,
    return
  }
  func.func @transform_0(%arg0: i32) -> (i32, i32, i32) {
    %c0_i32 = arith.constant 0 : i32
    %c0_i32_0 = arith.constant 0 : i32
    %c0_i32_1 = arith.constant 0 : i32
    return %arg0, %c0_i32, %c0_i32_0 : i32, i32, i32
  }
  func.func @transform_1(%arg0: i32) -> (i32, i32) {
    %c0_i32 = arith.constant 0 : i32
    %c0_i32_0 = arith.constant 0 : i32
    %c0_i32_1 = arith.constant 0 : i32
    return %c0_i32, %c0_i32_0 : i32, i32
  }
  func.func @transform_2(%arg0: i32) -> (i32, i32) {
    %c0_i32 = arith.constant 0 : i32
    %c0_i32_0 = arith.constant 0 : i32
    %c0_i32_1 = arith.constant 0 : i32
    return %c0_i32, %c0_i32_0 : i32, i32
  }
  func.func @transform_3(%arg0: i32) -> (i32, i32) {
    %c0_i32 = arith.constant 0 : i32
    %c0_i32_0 = arith.constant 0 : i32
    %c0_i32_1 = arith.constant 0 : i32
    return %c0_i32, %c0_i32_0 : i32, i32
  }
  func.func @transform_4(%arg0: i32) -> (i32, i32) {
    %c0_i32 = arith.constant 0 : i32
    %c0_i32_0 = arith.constant 0 : i32
    %c0_i32_1 = arith.constant 0 : i32
    return %c0_i32, %c0_i32_0 : i32, i32
  }
  func.func @transform_5(%arg0: i32) -> (i32, i32, i32) {
    %c0_i32 = arith.constant 0 : i32
    %c0_i32_0 = arith.constant 0 : i32
    %c0_i32_1 = arith.constant 0 : i32
    return %arg0, %c0_i32, %c0_i32_0 : i32, i32, i32
  }
}

</mosaic_0001>

<bundles_post_ra>
// kernel: tpu_custom_call.1
= control target key start
LH: loop header
LB: loop body
LE: loop exit
PB: predicated region body
PF: predicated region fallthrough
CT: control target
= control target key end

     0   :  { %10 = vsyncpa [#allocation3], 0  ;;  %s1311_s0 = inlined_call_operand.hbm [shape: f32[2,64,256], index: 0, kind: input, shape index: {}]   ;;  %s1312_s1 = inlined_call_operand.vmem [shape: f32[8,64], index: 1, kind: input, shape index: {}]   ;;  %s1313_s2 = inlined_call_operand.vmem [shape: f32[8,1], index: 2, kind: input, shape index: {}]   ;;  %s1314_s3 = inlined_call_operand.vmem [shape: f32[64,8], index: 3, kind: input, shape index: {}]   ;;  %s1315_s4 = inlined_call_operand.vmem [shape: f32[64,1], index: 4, kind: input, shape index: {}]   ;;  %s1316_s5 = inlined_call_operand.hbm [shape: f32[2,64,256], index: 5, kind: output, shape index: {}]  }
   0x1   :  { %12 = vsyncpa [#allocation3 + $0x1], 0 }
   0x2   :  { %13 = vsyncpa [#allocation4], 0 }
   0x3   :  { %15 = vsyncpa [#allocation4 + $0x1], 0  ;;  %s971_s18 = smov 0   ;;  %s973_s19 = smov 0  }
   0x4   :  { %s975_s20 = smov 0   ;;  %s977_s21 = smov 0  }
   0x5 LB: > { %s992_s22 = sadd.s32 4294967295, %s934_s21   ;;  %s717_s23 = sadd.s32 4294967294, %s934_s21   ;;  %s934_s21 = sphi %s977_s21, %s1328_s21   ;;  %s930_s20 = sphi %s975_s20, %s1327_s20   ;;  %s926_s19 = sphi %s973_s19, %s1326_s19   ;;  %s922_s18 = sphi %s971_s18, %s1325_s18  }
   0x6   : > { %s996_s24 = sadd.s32 1, %s934_s21   ;;  %s28_s25 = sadd.s32 1, %s930_s20 }
   0x7   : > { %s25_s26 = ssub.s32 %s934_s21, %s996_s24  ;;  %p35_p0 = scmp.ne.s32.totalorder %s930_s20, %s926_s19 }
   0x8   : > { %p26_p1 = scmp.eq.s32.totalorder %s25_s26, 0  ;;  %p36_p2 = scmp.eq.s32.totalorder %s934_s21, 0 }
   0x9   : > { %p41_p3 = scmp.ne.s32.totalorder %s926_s19, %s922_s18  ;;  %p42_p4 = scmp.eq.s32.totalorder %s992_s22, 0 }
   0xa   : > { %s1008_s27 = scalar_select %p26_p1, %s930_s20, %s28_s25  }
   0xb   : > { %p1010_p5 = por %p36_p2, %p35_p0  ;;  %p1014_p6 = por %p42_p4, %p41_p3 }
   0xc   : > { %p149_p7 = scmp.eq.s32.totalorder %s992_s22, 1  ;;  %p155_p8 = scmp.eq.s32.totalorder %s717_s23, 1 }
   0xd   : > { %p764_p10 = scmp.lt.s32.totalorder %s934_s21, 2  ;;  %s187_s7 = sand.u32 1, %s930_s20  }
   0xe   : > { %p1021_p11 = por %p149_p7, %p35_p0  ;;  %p1025_p12 = por %p155_p8, %p41_p3 }
   0xf   : > { %s748_s8 = sshll.u32 %s934_s21, 7  ;;  %s720_s9 = sshll.u32 %s187_s7, 7 }
  0x10   : > { %s196_s12 = scalar_lea.hbm %s1311_s0, %s748_s8  ;;  %s191_s14 = scalar_lea.vmem [#allocation2], %s720_s9 }
  0x11   : > { %s197_s13 = sshll.u32 %s196_s12, 4  ;;  %s199_s15 = sshll.u32 %s191_s14, 4  ;;  %s198_s13 = int_to_ptr.hbm [resolvable:$true] %s197_s13  ;;  %s200_s15 = int_to_ptr.vmem [resolvable:$true] %s199_s15 }
  0x12   : > { %p1036_p13 = pnand %p764_p10, %p1010_p5  ;;  %p723_p0 = scmp.ge.s32.totalorder %s934_s21, 1 }
  0x13   : > { %p207_p1 = scmp.lt.s32.totalorder %s934_s21, 3  ;;  %s188_s17 = scalar_lea.sflag [#allocation3], %s187_s7 }
  0x14   : > { %s838_s23 = sshra.s32 %s198_s13, 4  ;;  %p842_p3 = pneg %p1036_p13  ;;  %s839_s23 = int_to_ptr.hbm [resolvable:$true] %s838_s23 }
  0x15   : > { %s840_s25 = scalar_lea.hbm %s839_s23, 128  ;;  %s845_s28 = scalar_lea.hbm %s1311_s0, 256 }
  0x16   : > { %p841_p2 = scmp.ne.s32.totalorder %s839_s23, %s840_s25  ;;  %p846_p5 = scmp.lt.s32.totalorder %s839_s23, %s1311_s0 }
  0x17   : > { %p847_p8 = scmp.lt.s32.totalorder %s845_s28, %s840_s25 }
  0x18   : > { %p843_p4 = pnand %p842_p3, %p841_p2 }
  0x19   : > { %p848_p10 = por %p847_p8, %p846_p5 }
  0x1a   : > { %p844_p7 = pneg %p843_p4 }
  0x1c   : > { %p849_p9 = pnand %p848_p10, %p844_p7 }
  0x1e   : > { %852 = shalt.err (!%p849_p9)
}
  0x1f   : > { %s936_s7 = smov 256   ;;  %s937_s11 = smov 16  }
  0x20   : > { %759 = dma.hbm_to_vmem [thread:$0]  (!%p1036_p13), %s198_s13, 2048, %s200_s15, %s188_s17, %s936_s7, %s936_s7, %s937_s11  }
  0x21   : > { %p208_p2 = pnand %p723_p0, %p207_p1 }
  0x22   : > { %s1057_s12 = sand.u32 (!%p208_p2), 1, %s926_s19  }
  0x23   : > { %211 = sbr.rel (%p208_p2) target bundleno = 627 (0x273), region = 40  ;;  %s724_s14 = sshll.u32 (!%p208_p2), %s1057_s12, 7 }
  0x24   : > { %s214_s23 = scalar_lea.sflag (!%p208_p2), [#allocation3], %s1057_s12  ;;  %s217_s25 = scalar_lea.vmem (!%p208_p2), [#allocation2], %s724_s14 }
  0x28   : > { %913 = dma.done.wait (%p1014_p6), %s214_s23, 2048  }
  0x29   : > { %915 = vsyncadd (%p1014_p6), %s214_s23, 4294965248  ;;  %v1067_v0 = vld [vmem:[%s217_s25 + $0x70] sm:$0xff]  ;;  %v1069_v1 = vld [vmem:[%s217_s25 + $0x78] sm:$0xff]  ;;  %vm295_vm0 = vcmask 523264   ;;  %vm338_vm2 = vcmask 64512   ;;  %v938_v56 = vmov 0  }
  0x2a   : > { %v1071_v2 = vld [vmem:[%s217_s25 + $0x50] sm:$0xff]  ;;  %v282_v3 = vadd.f32 %v1069_v1, %v1067_v0  ;;  %v1075_v4 = vld [vmem:[%s217_s25 + $0x58] sm:$0xff]  ;;  %v1085_v9 = vld [vmem:[%s217_s25 + $0x60] sm:$0xff]  ;;  %803 = vset.pattern.permute.xlu2 %v938_v56  ;;  %804 = vset.pattern.permute.xlu0 %v938_v56  ;;  %s1245_s9 = scalar_lea.vmem [#allocation5], %s724_s14  ;;  %s749_s14 = sshll.u32 %s992_s22, 7 }
  0x2b   : > { %v276_v5 = vadd.f32 %v1075_v4, %v1071_v2  ;;  %v1079_v6 = vld [vmem:[%s217_s25 + $0x30] sm:$0xff]  ;;  %v1081_v7 = vld [vmem:[%s217_s25 + $0x38] sm:$0xff]  ;;  %v1087_v10 = vld [vmem:[%s217_s25 + $0x68] sm:$0xff]  ;;  %805 = vset.pattern.permute.xlu1 %v938_v56  ;;  %s640_s11 = scalar_lea.hbm %s1316_s5, %s749_s14  ;;  %s641_s23 = sshll.u32 %s1245_s9, 4  ;;  %s642_s23 = int_to_ptr.vmem [resolvable:$true] %s641_s23 }
  0x2c   : > { %283 = vadd.xlane.f32.xlu0 %v282_v3  ;;  %v270_v8 = vadd.f32 %v1081_v7, %v1079_v6  ;;  %v1089_v11 = vld [vmem:[%s217_s25 + $0x40] sm:$0xff]  ;;  %v1091_v12 = vld [vmem:[%s217_s25 + $0x48] sm:$0xff]  ;;  %v279_v15 = vadd.f32 %v1087_v10, %v1085_v9  ;;  %v1103_v18 = vld [vmem:[%s217_s25 + $0x10] sm:$0xff]  ;;  %s629_s22 = scalar_lea.sflag [#allocation4], %s1057_s12  ;;  %s888_s17 = scalar_lea.hbm %s1316_s5, 256 }
  0x2d   : > { %277 = vadd.xlane.f32.xlu1 %v276_v5  ;;  %v1093_v13 = vld [vmem:[%s217_s25 + $0x20] sm:$0xff]  ;;  %v1095_v14 = vld [vmem:[%s217_s25 + $0x28] sm:$0xff]  ;;  %v273_v16 = vadd.f32 %v1091_v12, %v1089_v11  ;;  %v1105_v19 = vld [vmem:[%s217_s25 + $0x18] sm:$0xff] }
  0x2e   : > { %271 = vadd.xlane.f32.xlu2 %v270_v8  ;;  %v267_v17 = vadd.f32 %v1095_v14, %v1093_v13  ;;  %v1107_v20 = vld [vmem:[%s217_s25] sm:$0xff]  ;;  %v1109_v21 = vld [vmem:[%s217_s25 + $0x8] sm:$0xff]  ;;  %v264_v22 = vadd.f32 %v1105_v19, %v1103_v18  ;;  %v325_v47 = vld [vmem:[%s1314_s3 + $0x18] sm:$0xff]  ;;  %s643_s25 = sshll.u32 %s640_s11, 4  ;;  %s644_s25 = int_to_ptr.hbm [resolvable:$true] %s643_s25 }
  0x2f   : > { %v261_v23 = vadd.f32 %v1109_v21, %v1107_v20  ;;  %v293_v40 = vld [vmem:[%s1312_s1] sm:$0xff]  ;;  %v328_v48 = vld [vmem:[%s1314_s3 + $0x30] sm:$0xff]  ;;  %v323_v49 = vld [vmem:[%s1314_s3 + $0x8] sm:$0xff]  ;;  %s882_s29 = sshra.s32 %s644_s25, 4  ;;  %s883_s29 = int_to_ptr.hbm [resolvable:$true] %s882_s29 }
  0x30   : > { %v294_v41 = vld [vmem:[%s1313_s2] sm:$0xff]  ;;  %v329_v51 = vld [vmem:[%s1314_s3 + $0x38] sm:$0xff]  ;;  %v324_v52 = vld [vmem:[%s1314_s3 + $0x10] sm:$0xff]  ;;  %s884_s13 = scalar_lea.hbm %s883_s29, 128  ;;  %p889_p0 = scmp.lt.s32.totalorder %s883_s29, %s1316_s5 }
  0x31   : > { %v322_v45 = vld [vmem:[%s1314_s3] sm:$0xff]  ;;  %v327_v53 = vld [vmem:[%s1314_s3 + $0x28] sm:$0xff]  ;;  %v333_v59 = vld [vmem:[%s1315_s4 + $0x18] sm:$0xff]  ;;  %p885_p6 = scmp.ne.s32.totalorder %s883_s29, %s884_s13  ;;  %p890_p1 = scmp.lt.s32.totalorder %s888_s17, %s884_s13 }
  0x32   : > { %v326_v50 = vld [vmem:[%s1314_s3 + $0x20] sm:$0xff]  ;;  %v336_v60 = vld [vmem:[%s1315_s4 + $0x30] sm:$0xff]  ;;  %v331_v61 = vld [vmem:[%s1315_s4 + $0x8] sm:$0xff] }
  0x33   : > { %v330_v54 = vld [vmem:[%s1315_s4] sm:$0xff]  ;;  %p886_p9 = pnand %p885_p6, %p1021_p11  ;;  %p891_p3 = por %p890_p1, %p889_p0 }
  0x34   : > { %280 = vadd.xlane.f32.xlu0 %v279_v15 }
  0x35   : > { %274 = vadd.xlane.f32.xlu1 %v273_v16  ;;  %p887_p13 = pneg %p886_p9 }
  0x36   : > { %268 = vadd.xlane.f32.xlu2 %v267_v17 }
  0x37   : > { %p892_p4 = pnand %p891_p3, %p887_p13 }
  0x3c   : > { %265 = vadd.xlane.f32.xlu0 %v264_v22 }
  0x3d   : > { %262 = vadd.xlane.f32.xlu1 %v261_v23 }
  0x9f   : > { %v284_v24 = vpop.xlane.xlu0 %283 }
  0xa0   : > { %v292_v25 = vmul.f32 0.00390625, %v284_v24  ;;  %v278_v26 = vpop.xlane.xlu1 %277 }
  0xa1   : > { %v272_v27 = vpop.xlane.xlu2 %271  ;;  %v290_v31 = vmul.f32 0.00390625, %v278_v26  ;;  %v332_v26 = vld [vmem:[%s1315_s4 + $0x10] sm:$0xff] }
  0xa2   : > { %307 = vmatpush.msra.mxu0 %v292_v25  ;;  %v288_v34 = vmul.f32 0.00390625, %v272_v27  ;;  %v334_v25 = vld [vmem:[%s1315_s4 + $0x20] sm:$0xff]  ;;  %v337_v27 = vld [vmem:[%s1315_s4 + $0x38] sm:$0xff] }
  0xa7   : > { %v281_v28 = vpop.xlane.xlu0 %280 }
  0xa8   : > { %v291_v29 = vmul.f32 0.00390625, %v281_v28  ;;  %v275_v30 = vpop.xlane.xlu1 %274 }
  0xa9   : > { %v289_v32 = vmul.f32 0.00390625, %v275_v30  ;;  %v269_v33 = vpop.xlane.xlu2 %268 }
  0xaa   : > { %308 = vmatpush.msra.mxu0 %v291_v29  ;;  %v287_v35 = vmul.f32 0.00390625, %v269_v33 }
  0xac   : > { %309 = vmatpush.msra.mxu0 %v290_v31 }
  0xae   : > { %310 = vmatpush.msra.mxu0 %v289_v32 }
  0xaf   : > { %v266_v36 = vpop.xlane.xlu0 %265 }
  0xb0   : > { %311 = vmatpush.msra.mxu0 %v288_v34  ;;  %v286_v37 = vmul.f32 0.00390625, %v266_v36  ;;  %v263_v38 = vpop.xlane.xlu1 %262 }
  0xb1   : > { %v285_v39 = vmul.f32 0.00390625, %v263_v38 }
  0xb2   : > { %312 = vmatpush.msra.mxu0 %v287_v35 }
  0xb4   : > { %313 = vmatpush.msra.mxu0 %v286_v37 }
  0xb6   : > { %314 = vmatpush.msra.mxu0 %v285_v39 }
  0xb7   : > { %726 = vmatmul.msk.f32.vlgmr.msra.gmra.mxu0 %vm295_vm0, %v293_v40 }
 0x134   : > { %v316_v42 = vpop.f32.mrf.mxu0 }
 0x135   : > { %v317_v43 = vadd.f32 %v316_v42, %v294_v41 }
 0x137   : > { %v320_v44 = vmul.f32 0.2, %v317_v43  ;;  %vm319_vm1 = vcmp.gt.f32.partialorder %v317_v43, 0.0 }
 0x139   : > { %v321_v46 = vsel %vm319_vm1, %v317_v43, %v320_v44  ;;  %v335_v43 = vld [vmem:[%s1315_s4 + $0x28] sm:$0xff] }
 0x13a   : > { %378 = vmatpush.msra.mxu1 %v321_v46  ;;  %750 = vmatpush.msra.mxu2 %v321_v46 }
 0x13b   : > { %751 = vmatpush.msra.mxu3 %v321_v46  ;;  %727 = vmatmul.msk.f32.vlgmr.msra.gmra.mxu1 %vm338_vm2, %v322_v45 }
 0x13c   : > { %730 = vmatmul.msk.f32.vlgmr.msra.gmra.mxu2 %vm338_vm2, %v325_v47  ;;  %733 = vmatmul.msk.f32.vlgmr.msra.gmra.mxu3 %vm338_vm2, %v328_v48 }
 0x143   : > { %728 = vmatmul.msk.f32.gmra.mxu1 %vm338_vm2, %v323_v49 }
 0x144   : > { %731 = vmatmul.msk.f32.gmra.mxu2 %vm338_vm2, %v326_v50  ;;  %734 = vmatmul.msk.f32.gmra.mxu3 %vm338_vm2, %v329_v51 }
 0x14b   : > { %729 = vmatmul.msk.f32.gmra.mxu1 %vm338_vm2, %v324_v52 }
 0x14c   : > { %732 = vmatmul.msk.f32.gmra.mxu2 %vm338_vm2, %v327_v53 }
 0x1b8   : > { %v380_v55 = vpop.f32.mrf.mxu1 }
 0x1b9   : > { %v381_v57 = vadd.f32 %v380_v55, %v330_v54 }
 0x1bb   : > { %v735_v58 = vmul.f32 -1.442695, %v381_v57 }
 0x1bd   : > { %806 = vpow2.f32 %v735_v58 }
 0x1bf   : > { %v389_v62 = vpop.f32.mrf.mxu2  ;;  %v398_v63 = vpop.f32.mrf.mxu3 }
 0x1c0   : > { %v390_v3 = vadd.f32 %v389_v62, %v333_v59  ;;  %v383_v5 = vpop.f32.mrf.mxu1  ;;  %v399_v8 = vadd.f32 %v398_v63, %v336_v60 }
 0x1c1   : > { %v384_v15 = vadd.f32 %v383_v5, %v331_v61 }
 0x1c2   : > { %v738_v16 = vmul.f32 -1.442695, %v390_v3  ;;  %v741_v23 = vmul.f32 -1.442695, %v399_v8 }
 0x1c3   : > { %v807_v17 = vpop.eup %806  ;;  %v736_v22 = vmul.f32 -1.442695, %v384_v15 }
 0x1c4   : > { %v428_v24 = vadd.f32 1.0, %v807_v17  ;;  %808 = vpow2.f32 %v738_v16 }
 0x1c5   : > { %810 = vpow2.f32 %v736_v22 }
 0x1c6   : > { %812 = vrcp.f32 %v428_v24  ;;  %v447_v49 = vand.u32 2147483648, %v428_v24  ;;  %v445_v51 = vand.u32 2147483647, %v428_v24  ;;  %vm441_vm4 = vweird.f32 %v428_v24 }
 0x1c7   : > { %814 = vpow2.f32 %v741_v23  ;;  %v392_v28 = vpop.f32.mrf.mxu2  ;;  %v401_v29 = vpop.f32.mrf.mxu3 }
 0x1c8   : > { %v393_v30 = vadd.f32 %v392_v28, %v334_v25  ;;  %v386_v31 = vpop.f32.mrf.mxu1  ;;  %v402_v33 = vadd.f32 %v401_v29, %v337_v27  ;;  %v448_v58 = vor.u32 1.1754944e-38, %v447_v49  ;;  %vm446_vm6 = vcmp.eq.f32.partialorder %v445_v51, 8.507059e+37 }
 0x1c9   : > { %v387_v32 = vadd.f32 %v386_v31, %v332_v26 }
 0x1ca   : > { %v809_v34 = vpop.eup %808  ;;  %v739_v35 = vmul.f32 -1.442695, %v393_v30  ;;  %v742_v42 = vmul.f32 -1.442695, %v402_v33 }
 0x1cb   : > { %v811_v36 = vpop.eup %810  ;;  %v1174_v37 = vadd.f32 1.0, %v809_v34  ;;  %v737_v38 = vmul.f32 -1.442695, %v387_v32 }
 0x1cc   : > { %v813_v39 = vpop.eup %812  ;;  %v1176_v40 = vadd.f32 1.0, %v811_v36  ;;  %816 = vpow2.f32 %v739_v35 }
 0x1cd   : > { %v815_v41 = vpop.eup %814  ;;  %818 = vrcp.f32 %v1174_v37  ;;  %v437_v44 = vmul.f32 %v813_v39, %v428_v24  ;;  %vm442_vm3 = vweird.f32 %v813_v39  ;;  %v492_v17 = vand.u32 2147483648, %v1174_v37 }
 0x1ce   : > { %820 = vrcp.f32 %v1176_v40  ;;  %v1183_v45 = vadd.f32 1.0, %v815_v41  ;;  %vm443_vm5 = vmor %vm441_vm4, %vm442_vm3  ;;  %v462_v16 = vand.u32 2147483648, %v1176_v40  ;;  %v460_v26 = vand.u32 2147483647, %v1176_v40 }
 0x1cf   : > { %822 = vpow2.f32 %v737_v38  ;;  %v395_v46 = vpop.f32.mrf.mxu2  ;;  %v438_v47 = vsub.f32 1.0, %v437_v44  ;;  %v490_v27 = vand.u32 2147483647, %v1174_v37  ;;  %vm456_vm9 = vweird.f32 %v1176_v40 }
 0x1d0   : > { %v396_v48 = vadd.f32 %v395_v46, %v335_v43  ;;  %824 = vpow2.f32 %v742_v42  ;;  %vm486_vm10 = vweird.f32 %v1174_v37  ;;  %v463_v33 = vor.u32 1.1754944e-38, %v462_v16 }
 0x1d1   : > { %v439_v50 = vmul.f32 %v813_v39, %v438_v47  ;;  %826 = vrcp.f32 %v1183_v45  ;;  %v493_v36 = vor.u32 1.1754944e-38, %v492_v17  ;;  %vm461_vm13 = vcmp.eq.f32.partialorder %v460_v26, 8.507059e+37 }
 0x1d2   : > { %v817_v52 = vpop.eup %816  ;;  %v740_v53 = vmul.f32 -1.442695, %v396_v48  ;;  %vm491_vm14 = vcmp.eq.f32.partialorder %v490_v27, 8.507059e+37  ;;  %vm531_vm1 = vweird.f32 %v1183_v45  ;;  %v535_v16 = vand.u32 2147483647, %v1183_v45 }
 0x1d3   : > { %v819_v54 = vpop.eup %818  ;;  %v1186_v55 = vadd.f32 1.0, %v817_v52  ;;  %v440_v56 = vadd.f32 %v813_v39, %v439_v50 }
 0x1d4   : > { %v821_v57 = vpop.eup %820  ;;  %828 = vpow2.f32 %v740_v53  ;;  %v482_v59 = vmul.f32 %v819_v54, %v1174_v37  ;;  %vm487_vm7 = vweird.f32 %v819_v54 }
 0x1d5   : > { %v823_v60 = vpop.eup %822  ;;  %830 = vrcp.f32 %v1186_v55  ;;  %v444_v61 = vsel %vm443_vm5, %v813_v39, %v440_v56  ;;  %v452_v62 = vmul.f32 %v821_v57, %v1176_v40  ;;  %vm457_vm8 = vweird.f32 %v821_v57  ;;  %vm488_vm11 = vmor %vm486_vm10, %vm487_vm7 }
 0x1d6   : > { %v1191_v63 = vadd.f32 1.0, %v823_v60  ;;  %v449_v3 = vsel %vm446_vm6, %v448_v58, %v444_v61  ;;  %v483_v5 = vsub.f32 1.0, %v482_v59  ;;  %v825_v8 = vpop.eup %824  ;;  %vm458_vm12 = vmor %vm456_vm9, %vm457_vm8  ;;  %v507_v47 = vand.u32 2147483648, %v1186_v55 }
 0x1d7   : > { %558 = vperm.xlu2 %803, %v449_v3   ;;  %v453_v15 = vsub.f32 1.0, %v452_v62  ;;  %v1195_v22 = vpop.eup %826  ;;  %v1198_v23 = vadd.f32 1.0, %v825_v8  ;;  %v505_v49 = vand.u32 2147483647, %v1186_v55  ;;  %vm501_vm0 = vweird.f32 %v1186_v55 }
 0x1d8   : > { %832 = vrcp.f32 %v1191_v63  ;;  %v484_v24 = vmul.f32 %v819_v54, %v483_v5  ;;  %v527_v34 = vmul.f32 %v1195_v22, %v1183_v45  ;;  %v477_v51 = vand.u32 2147483648, %v1191_v63 }
 0x1d9   : > { %v454_v25 = vmul.f32 %v821_v57, %v453_v15  ;;  %834 = vrcp.f32 %v1198_v23  ;;  %v475_v56 = vand.u32 2147483647, %v1191_v63  ;;  %vm471_vm4 = vweird.f32 %v1191_v63 }
 0x1da   : > { %v829_v28 = vpop.eup %828  ;;  %v485_v29 = vadd.f32 %v819_v54, %v484_v24  ;;  %v528_v44 = vsub.f32 1.0, %v527_v34  ;;  %v508_v59 = vor.u32 1.1754944e-38, %v507_v47  ;;  %vm506_vm5 = vcmp.eq.f32.partialorder %v505_v49, 8.507059e+37 }
 0x1db   : > { %v831_v30 = vpop.eup %830  ;;  %v1204_v31 = vadd.f32 1.0, %v829_v28  ;;  %v455_v32 = vadd.f32 %v821_v57, %v454_v25  ;;  %vm532_vm6 = vweird.f32 %v1195_v22  ;;  %v478_v62 = vor.u32 1.1754944e-38, %v477_v51 }
 0x1dc   : > { %v489_v35 = vsel %vm488_vm11, %v819_v54, %v485_v29  ;;  %v497_v38 = vmul.f32 %v831_v30, %v1186_v55  ;;  %vm502_vm15 = vweird.f32 %v831_v30  ;;  %v537_v8 = vand.u32 2147483648, %v1183_v45  ;;  %vm1228_vm9 = vmor %vm531_vm1, %vm532_vm6 }
 0x1dd   : > { %836 = vrcp.f32 %v1204_v31  ;;  %v459_v39 = vsel %vm458_vm12, %v821_v57, %v455_v32  ;;  %v494_v41 = vsel %vm491_vm14, %v493_v36, %v489_v35  ;;  %vm503_vm3 = vmor %vm501_vm0, %vm502_vm15  ;;  %v529_v57 = vmul.f32 %v1195_v22, %v528_v44 }
 0x1de   : > { %v833_v37 = vpop.eup %832  ;;  %v464_v40 = vsel %vm461_vm13, %v463_v33, %v459_v39  ;;  %v498_v42 = vsub.f32 1.0, %v497_v38  ;;  %vm476_vm8 = vcmp.eq.f32.partialorder %v475_v56, 8.507059e+37  ;;  %v522_v28 = vand.u32 2147483648, %v1204_v31 }
 0x1df   : > { %563 = vperm.xlu0 %804, %v464_v40   ;;  %573 = vperm.xlu2 %803, %v494_v41   ;;  %v467_v43 = vmul.f32 %v833_v37, %v1191_v63  ;;  %v835_v50 = vpop.eup %834  ;;  %vm472_vm2 = vweird.f32 %v833_v37  ;;  %v530_v63 = vadd.f32 %v1195_v22, %v529_v57  ;;  %v538_v29 = vor.u32 1.1754944e-38, %v537_v8 }
 0x1e0   : > { %v499_v46 = vmul.f32 %v831_v30, %v498_v42  ;;  %v542_v55 = vmul.f32 %v835_v50, %v1198_v23  ;;  %vm473_vm7 = vmor %vm471_vm4, %vm472_vm2  ;;  %vm516_vm11 = vweird.f32 %v1204_v31  ;;  %vm536_vm12 = vcmp.eq.f32.partialorder %v535_v16, 8.507059e+37 }
 0x1e1   : > { %v468_v48 = vsub.f32 1.0, %v467_v43  ;;  %v534_v32 = vsel %vm1228_vm9, %v1195_v22, %v530_v63  ;;  %v523_v34 = vor.u32 1.1754944e-38, %v522_v28  ;;  %vm546_vm15 = vweird.f32 %v1198_v23 }
 0x1e2   : > { %v500_v52 = vadd.f32 %v831_v30, %v499_v46  ;;  %v543_v26 = vsub.f32 1.0, %v542_v55  ;;  %v539_v35 = vsel %vm536_vm12, %v538_v29, %v534_v32  ;;  %vm547_vm0 = vweird.f32 %v835_v50 }
 0x1e3   : > { %v837_v53 = vpop.eup %836  ;;  %v469_v54 = vmul.f32 %v833_v37, %v468_v48  ;;  %v552_v38 = vand.u32 2147483648, %v1198_v23  ;;  %v550_v39 = vand.u32 2147483647, %v1198_v23  ;;  %vm548_vm1 = vmor %vm546_vm15, %vm547_vm0 }
 0x1e4   : > { %v504_v58 = vsel %vm503_vm3, %v831_v30, %v500_v52  ;;  %v512_v60 = vmul.f32 %v837_v53, %v1204_v31  ;;  %vm517_vm10 = vweird.f32 %v837_v53  ;;  %v520_v30 = vand.u32 2147483647, %v1204_v31 }
 0x1e5   : > { %v470_v61 = vadd.f32 %v833_v37, %v469_v54  ;;  %v509_v3 = vsel %vm506_vm5, %v508_v59, %v504_v58  ;;  %vm518_vm13 = vmor %vm516_vm11, %vm517_vm10  ;;  %v544_v33 = vmul.f32 %v835_v50, %v543_v26  ;;  %v553_v22 = vor.u32 1.1754944e-38, %v552_v38 }
 0x1e6   : > { %v513_v5 = vsub.f32 1.0, %v512_v60  ;;  %vm521_vm14 = vcmp.eq.f32.partialorder %v520_v30, 8.507059e+37  ;;  %vm551_vm2 = vcmp.eq.f32.partialorder %v550_v39, 8.507059e+37 }
 0x1e7   : > { %v474_v15 = vsel %vm473_vm7, %v833_v37, %v470_v61  ;;  %578 = vperm.xlu2 %803, %v509_v3   ;;  %v545_v31 = vadd.f32 %v835_v50, %v544_v33 }
 0x1e8   : > { %v479_v17 = vsel %vm476_vm8, %v478_v62, %v474_v15  ;;  %v514_v24 = vmul.f32 %v837_v53, %v513_v5 }
 0x1e9   : > { %568 = vperm.xlu1 %805, %v479_v17   ;;  %v549_v37 = vsel %vm548_vm1, %v835_v50, %v545_v31 }
 0x1ea   : > { %v515_v27 = vadd.f32 %v837_v53, %v514_v24  ;;  %v554_v40 = vsel %vm551_vm2, %v553_v22, %v549_v37 }
 0x1ec   : > { %v519_v45 = vsel %vm518_vm13, %v837_v53, %v515_v27 }
 0x1ed   : > { %v524_v36 = vsel %vm521_vm14, %v523_v34, %v519_v45 }
 0x1ef   : > { %588 = vperm.xlu2 %803, %v539_v35  }
 0x1f1   : > { %583 = vperm.xlu1 %805, %v524_v36  }
 0x1f9   : > { %593 = vperm.xlu1 %805, %v554_v40  }
 0x231   : > { %v559_v41 = vpop.permute.xlu2 %558 }
 0x232   : > { %v596_v42 = vmul.f32 %v559_v41, %v1107_v20  ;;  %v597_v43 = vmul.f32 %v559_v41, %v1109_v21 }
 0x234   : > { %612 = vst [vmem:[%s1245_s9] sm:$0xff] %v596_v42 }
 0x235   : > { %613 = vst [vmem:[%s1245_s9 + $0x8] sm:$0xff] %v597_v43 }
 0x239   : > { %v574_v23 = vpop.permute.xlu2 %573 }
 0x23a   : > { %v602_v44 = vmul.f32 %v574_v23, %v1079_v6  ;;  %v603_v20 = vmul.f32 %v574_v23, %v1081_v7 }
 0x23c   : > { %618 = vst [vmem:[%s1245_s9 + $0x30] sm:$0xff] %v602_v44 }
 0x23d   : > { %619 = vst [vmem:[%s1245_s9 + $0x38] sm:$0xff] %v603_v20 }
 0x241   : > { %v579_v21 = vpop.permute.xlu2 %578 }
 0x242   : > { %v604_v46 = vmul.f32 %v579_v21, %v1089_v11  ;;  %v605_v47 = vmul.f32 %v579_v21, %v1091_v12 }
 0x244   : > { %620 = vst [vmem:[%s1245_s9 + $0x40] sm:$0xff] %v604_v46 }
 0x245   : > { %621 = vst [vmem:[%s1245_s9 + $0x48] sm:$0xff] %v605_v47 }
 0x249   : > { %v589_v48 = vpop.permute.xlu2 %588 }
 0x24a   : > { %v608_v49 = vmul.f32 %v589_v48, %v1085_v9  ;;  %v609_v6 = vmul.f32 %v589_v48, %v1087_v10 }
 0x24c   : > { %624 = vst [vmem:[%s1245_s9 + $0x60] sm:$0xff] %v608_v49 }
 0x24d   : > { %625 = vst [vmem:[%s1245_s9 + $0x68] sm:$0xff] %v609_v6 }
 0x251   : > { %v564_v7 = vpop.permute.xlu0 %563 }
 0x252   : > { %v598_v50 = vmul.f32 %v564_v7, %v1103_v18  ;;  %v599_v11 = vmul.f32 %v564_v7, %v1105_v19 }
 0x254   : > { %614 = vst [vmem:[%s1245_s9 + $0x10] sm:$0xff] %v598_v50 }
 0x255   : > { %615 = vst [vmem:[%s1245_s9 + $0x18] sm:$0xff] %v599_v11 }
 0x25b   : > { %v569_v12 = vpop.permute.xlu1 %568 }
 0x25c   : > { %v600_v51 = vmul.f32 %v569_v12, %v1093_v13  ;;  %v601_v52 = vmul.f32 %v569_v12, %v1095_v14 }
 0x25e   : > { %616 = vst [vmem:[%s1245_s9 + $0x20] sm:$0xff] %v600_v51 }
 0x25f   : > { %617 = vst [vmem:[%s1245_s9 + $0x28] sm:$0xff] %v601_v52 }
 0x263   : > { %v584_v9 = vpop.permute.xlu1 %583 }
 0x264   : > { %v606_v10 = vmul.f32 %v584_v9, %v1071_v2  ;;  %v607_v18 = vmul.f32 %v584_v9, %v1075_v4 }
 0x266   : > { %622 = vst [vmem:[%s1245_s9 + $0x50] sm:$0xff] %v606_v10 }
 0x267   : > { %623 = vst [vmem:[%s1245_s9 + $0x58] sm:$0xff] %v607_v18 }
 0x26b   : > { %v594_v13 = vpop.permute.xlu1 %593 }
 0x26c   : > { %v610_v14 = vmul.f32 %v594_v13, %v1067_v0  ;;  %v611_v19 = vmul.f32 %v594_v13, %v1069_v1 }
 0x26e   : > { %626 = vst [vmem:[%s1245_s9 + $0x70] sm:$0xff] %v610_v14 }
 0x26f   : > { %627 = vst [vmem:[%s1245_s9 + $0x78] sm:$0xff] %v611_v19 }
 0x270   : > { %895 = shalt.err (!%p892_p4)
}
 0x271   : > { %s939_s12 = smov 256   ;;  %s940_s28 = smov 16  }
 0x272   : > { %754 = dma.vmem_to_hbm [thread:$0]  (%p1021_p11), %s642_s23, 2048, %s644_s25, %s629_s22, %s939_s12, %s939_s12, %s940_s28  }
 0x273 PF: > { %s658_s9 = sand.u32 1, %s922_s18   ;;  %p1324_p7 = scmp.ge.s32.totalorder %s934_s21, 2 }
 0x274   : > { %s659_s14 = scalar_lea.sflag [#allocation4], %s658_s9 }
 0x275   : > { %p761_p5 = pnand %p1324_p7, %p1025_p12 }
 0x277   : > { %p762_p8 = pneg %p761_p5 }
 0x279   : > { %917 = dma.done.wait (%p762_p8), %s659_s14, 2048  }
 0x27a   : > { %919 = vsyncadd (%p762_p8), %s659_s14, 4294965248  ;;  %p18_p10 = scmp.ge.s32.totalorder %s996_s24, 4   ;;  %s1325_s18 = smov %s926_s19 }
 0x27b   : > { %s1326_s19 = smov %s930_s20  ;;  %s1327_s20 = smov %s1008_s27 }
 0x27c   : > { %s1328_s21 = smov %s996_s24  ;;  %20 = sbr.rel (!%p18_p10) target bundleno = 5 (0x5), region = 85 }
 0x281   :  { %665 = vsyncpa [#allocation3], 1 }
 0x282   :  { %667 = vsyncpa [#allocation3 + $0x1], 1 }
 0x283   :  { %668 = vsyncpa [#allocation4], 1 }
 0x284   :  { %670 = vsyncpa [#allocation4 + $0x1], 1 }

</bundles_post_ra>
